<compile_context>
chip_gen: v6e
topology: v6e:2x2x1
jax: 0.10.0
libtpu: 0.0.40
codegen_flags: <defaults>
</compile_context>

<pallas_src>
import functools
import math

import jax
import jax.numpy as jnp
from jax.experimental import pallas as pl
from jax.experimental.pallas import tpu as pltpu


def _label_smoothing_kernel(tgt_ref, x_ref, out_ref, *,
                            n_rows, padding_idx, fill, confidence):
    # x_ref:   (tn, V) log-probs (native dtype, upcast once to f32)
    # tgt_ref: (tn, 1) int32 targets
    # out_ref: (1, 8, 128) f32 lane-dense partial (block sum at [0,0,0])
    x = x_ref[...].astype(jnp.float32)
    tgt = tgt_ref[...]                                       # (tn, 1)
    tn, v = x.shape

    # Row validity: real row (masks the ragged / OOB tail of the last tile)
    # and not a padding token (the reference's index_fill_ of padded rows).
    row = jax.lax.broadcasted_iota(jnp.int32, (tn, 1), 0) + pl.program_id(0) * tn
    valid = jnp.logical_and(tgt != padding_idx, row < n_rows)   # (tn, 1)

    col = jax.lax.broadcasted_iota(jnp.int32, (1, v), 1)         # lane ids
    is_tgt = col == tgt                                          # (tn, V)

    # Select-based masking only (no 0*x): garbage/-inf entries in masked-out
    # positions can never leak a NaN into the sums.
    xv = jnp.where(valid, x, 0.0)            # zero padded / out-of-range rows

    block = jnp.float32(0.0)
    if confidence > 0.0:                     # compile-time guard (xlogy)
        s_tgt = jnp.sum(jnp.where(is_tgt, xv, 0.0))          # sum_r x[r, tgt_r]
        block = block - jnp.float32(confidence) * s_tgt
    if fill > 0.0:                           # compile-time guard (xlogy)
        x_oth = jnp.where(is_tgt, 0.0, xv)                    # v != tgt_r
        x_oth = jnp.where(col != padding_idx, x_oth, 0.0)     # drop pad column
        block = block - jnp.float32(fill) * jnp.sum(x_oth)

    # Lane-dense (8,128) partial tile: block sum in one slot, zeros elsewhere,
    # so the wrapper can finish with an unstrided jnp.sum(partials).
    r8 = jax.lax.broadcasted_iota(jnp.int32, (8, 128), 0)
    c8 = jax.lax.broadcasted_iota(jnp.int32, (8, 128), 1)
    tile = jnp.where(jnp.logical_and(r8 == 0, c8 == 0), block, 0.0)
    out_ref[...] = tile[None]


def _vmem_capacity_bytes():
    try:
        cap = int(pltpu.get_tpu_info().vmem_capacity_bytes)
        if cap > 0:
            return cap
    except Exception:
        pass
    return 64 << 20  # conservative fallback (v7x per-TC VMEM)


def _round_up8(n):
    return max(8, ((int(n) + 7) // 8) * 8)


def _pick_block_rows(n_rows, vocab, x_itemsize, vmem_cap):
    """Row tile sizing: ~4 MiB per (double-buffered) x tile already sits on the
    HBM roofline and fits every generation (64 MiB/TC on v7x) with headroom for
    the f32 upcast / select temporaries; also cap rows so the 1-D "parallel"
    grid has ~>=8 steps whenever N allows (megacore load balance)."""
    per_buffer_budget = min(vmem_cap // 16, 4 << 20)
    rows = per_buffer_budget // max(1, vocab * x_itemsize)
    rows = max(8, (rows // 8) * 8)
    rows = min(rows, 1024)
    rows = min(rows, _round_up8((n_rows + 7) // 8))   # aim for >= ~8 grid steps
    rows = min(rows, _round_up8(n_rows))
    return int(rows)


def label_smoothing_loss(x, target, *, size, padding_idx, smoothing,
                         block_rows=None):
    """x: (N, V) log-probs (f32/bf16); target: (N,) int class indices.

    Returns nn.KLDivLoss(reduction='sum')(x, true_dist) for the label-smoothed
    true_dist of the reference module, i.e. LabelSmoothing.forward(x, target).
    """
    N, V = x.shape
    assert V == size
    confidence = 1.0 - smoothing
    if smoothing > 0.0:
        assert size > 2, "label smoothing requires size > 2"
        fill = smoothing / (size - 2)
    else:
        fill = 0.0

    vmem_cap = _vmem_capacity_bytes()
    if block_rows is None:
        block_rows = _pick_block_rows(N, V, x.dtype.itemsize, vmem_cap)
    else:
        block_rows = _round_up8(block_rows)

    grid = (N + block_rows - 1) // block_rows   # ragged tail masked in-kernel

    tgt2d = target.astype(jnp.int32).reshape(N, 1)

    kernel = functools.partial(
        _label_smoothing_kernel,
        n_rows=N, padding_idx=padding_idx, fill=fill, confidence=confidence)

    # VMEM accounting: double-buffered streams (target tile is lane-padded to
    # 128 lanes in VMEM) + headroom for the f32 upcast / compare-select
    # temporaries of one tile, capped at physical VMEM.
    x_tile = block_rows * V * x.dtype.itemsize
    tgt_tile = block_rows * 128 * 4
    out_tile = 8 * 128 * 4
    f32_tile = block_rows * V * 4
    needed = 2 * (x_tile + tgt_tile + out_tile) + 4 * f32_tile + (8 << 20)
    vmem_limit = int(min(vmem_cap, max(needed, 32 << 20)))

    partials = pl.pallas_call(
        kernel,
        out_shape=jax.ShapeDtypeStruct((grid, 8, 128), jnp.float32),
        grid_spec=pltpu.PrefetchScalarGridSpec(
            num_scalar_prefetch=0,
            grid=(grid,),
            in_specs=[
                pl.BlockSpec((block_rows, 1), lambda i: (i, 0)),   # targets
                pl.BlockSpec((block_rows, V), lambda i: (i, 0)),   # x log-probs
            ],
            out_specs=pl.BlockSpec((1, 8, 128), lambda i: (i, 0, 0)),
        ),
        compiler_params=pltpu.CompilerParams(
            dimension_semantics=("parallel",),
            vmem_limit_bytes=vmem_limit),
    )(tgt2d, x)

    # Constant part per valid (non-padding) row, added outside the kernel so no
    # in-kernel transcendental is needed (xlogy convention for 0 coefficients).
    c0 = 0.0
    if confidence > 0.0:
        c0 += confidence * math.log(confidence)
    if fill > 0.0:
        c0 += (size - 2) * fill * math.log(fill)
    n_valid = jnp.sum((target != padding_idx).astype(jnp.float32))
    return jnp.float32(c0) * n_valid + jnp.sum(partials)


def _reference(x, target, *, size, padding_idx, smoothing):
    confidence = 1.0 - smoothing
    N, V = x.shape
    fill = smoothing / (size - 2) if smoothing > 0.0 else 0.0
    td = jnp.full((N, V), fill, dtype=jnp.float32)
    td = td.at[jnp.arange(N), target].set(confidence)
    td = td.at[:, padding_idx].set(0.0)
    td = jnp.where((target == padding_idx)[:, None], 0.0, td)
    xf = x.astype(jnp.float32)
    term = jnp.where(td > 0, td * (jnp.log(jnp.where(td > 0, td, 1.0)) - xf), 0.0)
    return jnp.sum(term)


if __name__ == "__main__":
    key = jax.random.PRNGKey(0)
    kx1, kt1, kx2, kt2, kx3, kt3 = jax.random.split(key, 6)
    padding_idx = 0

    # Case 1: small lane-dense vocab, f32, smoothing on, auto-picked tile.
    N1, V1 = 64, 256
    x1 = jax.nn.log_softmax(jax.random.normal(kx1, (N1, V1), jnp.float32), -1)
    t1 = jax.random.randint(kt1, (N1,), 0, V1, dtype=jnp.int32)
    t1 = t1.at[3].set(padding_idx).at[17].set(padding_idx)   # padded tokens
    out1 = jax.block_until_ready(label_smoothing_loss(
        x1, t1, size=V1, padding_idx=padding_idx, smoothing=0.1))
    ref1 = _reference(x1, t1, size=V1, padding_idx=padding_idx, smoothing=0.1)
    assert jnp.allclose(out1, ref1, rtol=1e-5, atol=1e-4), (out1, ref1)

    # Case 2: ragged N with a forced small block -> the last tile's OOB rows
    # are masked in-kernel (no HBM padding copy of x), several parallel steps.
    N2, V2 = 50, 128
    x2 = jax.nn.log_softmax(jax.random.normal(kx2, (N2, V2), jnp.float32), -1)
    t2 = jax.random.randint(kt2, (N2,), 0, V2, dtype=jnp.int32).at[7].set(padding_idx)
    out2 = jax.block_until_ready(label_smoothing_loss(
        x2, t2, size=V2, padding_idx=padding_idx, smoothing=0.1, block_rows=16))
    ref2 = _reference(x2, t2, size=V2, padding_idx=padding_idx, smoothing=0.1)
    assert jnp.allclose(out2, ref2, rtol=1e-5, atol=1e-4), (out2, ref2)

    # Case 3: bf16 log-probs, smoothing == 0 (exercises the fill == 0 guards
    # and the ragged tail with the auto-picked tile).
    N3, V3 = 40, 256
    x3 = jax.nn.log_softmax(
        jax.random.normal(kx3, (N3, V3), jnp.float32), -1).astype(jnp.bfloat16)
    t3 = jax.random.randint(kt3, (N3,), 0, V3, dtype=jnp.int32).at[0].set(padding_idx)
    out3 = jax.block_until_ready(label_smoothing_loss(
        x3, t3, size=V3, padding_idx=padding_idx, smoothing=0.0))
    ref3 = _reference(x3, t3, size=V3, padding_idx=padding_idx, smoothing=0.0)
    assert jnp.allclose(out3, ref3, rtol=1e-4, atol=1e-3), (out3, ref3)

    print("KERNEL_OK")
</pallas_src>

<mosaic_0001>
module attributes {stable_mosaic.version = 11 : i64} {
  func.func @_label_smoothing_kernel(%arg0: i32, %arg1: memref<8x1xi32, #tpu.memory_space<vmem>>, %arg2: memref<8x256xf32, #tpu.memory_space<vmem>>, %arg3: memref<1x8x128xf32, #tpu.memory_space<vmem>>) attributes {dimension_semantics = [#tpu.dimension_semantics<parallel>], iteration_bounds = array<i64: 8>, scalar_prefetch = 0 : i64, scratch_operands = 0 : i64, tpu.core_type = #tpu.core_type<tc>, window_params = [{transform_indices = @transform_0, window_bounds = array<i64: 8, 1>}, {transform_indices = @transform_1, window_bounds = array<i64: 8, 256>}, {transform_indices = @transform_2, window_bounds = array<i64: 1, 8, 128>}]} {
    %c0 = arith.constant 0 : index
    %c0_0 = arith.constant 0 : index
    %0 = vector.load %arg2[%c0, %c0_0] : memref<8x256xf32, #tpu.memory_space<vmem>>, vector<8x256xf32>
    %c0_1 = arith.constant 0 : index
    %c0_2 = arith.constant 0 : index
    %1 = vector.load %arg1[%c0_1, %c0_2] : memref<8x1xi32, #tpu.memory_space<vmem>>, vector<8x1xi32>
    %2 = tpu.iota {dimensions = array<i32: 0>} : vector<8x1xi32>
    %c8_i32 = arith.constant 8 : i32
    %3 = arith.muli %arg0, %c8_i32 : i32
    %4 = vector.broadcast %3 : i32 to vector<8x1xi32>
    %5 = arith.addi %2, %4 : vector<8x1xi32>
    %c0_i32 = arith.constant 0 : i32
    %6 = vector.broadcast %c0_i32 : i32 to vector<8x1xi32>
    %7 = arith.cmpi ne, %1, %6 : vector<8x1xi32>
    %c64_i32 = arith.constant 64 : i32
    %8 = vector.broadcast %c64_i32 : i32 to vector<8x1xi32>
    %9 = arith.cmpi slt, %5, %8 : vector<8x1xi32>
    %10 = arith.andi %7, %9 : vector<8x1xi1>
    %11 = tpu.iota {dimensions = array<i32: 1>} : vector<1x256xi32>
    %12 = vector.broadcast %11 : vector<1x256xi32> to vector<8x256xi32>
    %13 = vector.broadcast %1 : vector<8x1xi32> to vector<8x256xi32>
    %14 = arith.cmpi eq, %12, %13 : vector<8x256xi32>
    %cst = arith.constant 0.000000e+00 : f32
    %15 = vector.shape_cast %10 : vector<8x1xi1> to vector<8x1xi1>
    %16 = vector.broadcast %15 : vector<8x1xi1> to vector<8x256xi1>
    %17 = vector.broadcast %cst : f32 to vector<8x256xf32>
    %18 = arith.select %16, %0, %17 : vector<8x256xi1>, vector<8x256xf32>
    %cst_3 = arith.constant 0.000000e+00 : f32
    %19 = vector.broadcast %cst_3 : f32 to vector<8x256xf32>
    %20 = arith.select %14, %18, %19 : vector<8x256xi1>, vector<8x256xf32>
    %21 = vector.shape_cast %20 : vector<8x256xf32> to vector<1x8x256xf32>
    %cst_4 = arith.constant dense<0.000000e+00> : vector<1xf32>
    %22 = vector.multi_reduction <add>, %21, %cst_4 [1, 2] : vector<1x8x256xf32> to vector<1xf32>
    %23 = vector.shape_cast %22 : vector<1xf32> to vector<1x1x1xf32>
    %24 = vector.extract %23[0, 0, 0] : f32 from vector<1x1x1xf32>
    %cst_5 = arith.constant 0.899999976 : f32
    %25 = arith.mulf %cst_5, %24 : f32
    %cst_6 = arith.constant 0.000000e+00 : f32
    %26 = arith.subf %cst_6, %25 : f32
    %cst_7 = arith.constant 0.000000e+00 : f32
    %27 = vector.broadcast %cst_7 : f32 to vector<8x256xf32>
    %28 = arith.select %14, %27, %18 : vector<8x256xi1>, vector<8x256xf32>
    %c0_i32_8 = arith.constant 0 : i32
    %29 = vector.broadcast %c0_i32_8 : i32 to vector<1x256xi32>
    %30 = arith.cmpi ne, %11, %29 : vector<1x256xi32>
    %cst_9 = arith.constant 0.000000e+00 : f32
    %31 = vector.shape_cast %30 : vector<1x256xi1> to vector<1x256xi1>
    %32 = vector.broadcast %31 : vector<1x256xi1> to vector<8x256xi1>
    %33 = vector.broadcast %cst_9 : f32 to vector<8x256xf32>
    %34 = arith.select %32, %28, %33 : vector<8x256xi1>, vector<8x256xf32>
    %35 = vector.shape_cast %34 : vector<8x256xf32> to vector<1x8x256xf32>
    %cst_10 = arith.constant dense<0.000000e+00> : vector<1xf32>
    %36 = vector.multi_reduction <add>, %35, %cst_10 [1, 2] : vector<1x8x256xf32> to vector<1xf32>
    %37 = vector.shape_cast %36 : vector<1xf32> to vector<1x1x1xf32>
    %38 = vector.extract %37[0, 0, 0] : f32 from vector<1x1x1xf32>
    %cst_11 = arith.constant 3.93700786E-4 : f32
    %39 = arith.mulf %cst_11, %38 : f32
    %40 = arith.subf %26, %39 : f32
    %41 = tpu.iota {dimensions = array<i32: 0>} : vector<8x128xi32>
    %42 = tpu.iota {dimensions = array<i32: 1>} : vector<8x128xi32>
    %c0_i32_12 = arith.constant 0 : i32
    %43 = vector.broadcast %c0_i32_12 : i32 to vector<8x128xi32>
    %44 = arith.cmpi eq, %41, %43 : vector<8x128xi32>
    %c0_i32_13 = arith.constant 0 : i32
    %45 = vector.broadcast %c0_i32_13 : i32 to vector<8x128xi32>
    %46 = arith.cmpi eq, %42, %45 : vector<8x128xi32>
    %47 = arith.andi %44, %46 : vector<8x128xi1>
    %cst_14 = arith.constant 0.000000e+00 : f32
    %48 = vector.broadcast %40 : f32 to vector<8x128xf32>
    %49 = vector.broadcast %cst_14 : f32 to vector<8x128xf32>
    %50 = arith.select %47, %48, %49 : vector<8x128xi1>, vector<8x128xf32>
    %51 = vector.shape_cast %50 : vector<8x128xf32> to vector<1x8x128xf32>
    %c0_15 = arith.constant 0 : index
    %c0_16 = arith.constant 0 : index
    %c0_17 = arith.constant 0 : index
    %52 = vector.load %arg3[%c0_15, %c0_16, %c0_17] : memref<1x8x128xf32, #tpu.memory_space<vmem>>, vector<1x8x128xf32>
    tpu.vector_store %arg3[%c0_15, %c0_16, %c0_17], %51 {strides = array<i32>} : memref<1x8x128xf32, #tpu.memory_space<vmem>>, vector<1x8x128xf32>,
    return
  }
  func.func @transform_0(%arg0: i32) -> (i32, i32) {
    %c0_i32 = arith.constant 0 : i32
    %c0_i32_0 = arith.constant 0 : i32
    return %arg0, %c0_i32 : i32, i32
  }
  func.func @transform_1(%arg0: i32) -> (i32, i32) {
    %c0_i32 = arith.constant 0 : i32
    %c0_i32_0 = arith.constant 0 : i32
    return %arg0, %c0_i32 : i32, i32
  }
  func.func @transform_2(%arg0: i32) -> (i32, i32, i32) {
    %c0_i32 = arith.constant 0 : i32
    %c0_i32_0 = arith.constant 0 : i32
    %c0_i32_1 = arith.constant 0 : i32
    return %arg0, %c0_i32, %c0_i32_0 : i32, i32, i32
  }
}

</mosaic_0001>

<bundles_post_ra>
// kernel: tpu_custom_call.1
= control target key start
LH: loop header
LB: loop body
LE: loop exit
PB: predicated region body
PF: predicated region fallthrough
CT: control target
= control target key end

     0   :  { %7 = vsyncpa [#allocation3], 0  ;;  %s673_s0 = inlined_call_operand.vmem [shape: s32[64,1], index: 0, kind: input, shape index: {}]   ;;  %s674_s1 = inlined_call_operand.hbm [shape: f32[64,256], index: 1, kind: input, shape index: {}]   ;;  %s675_s2 = inlined_call_operand.hbm [shape: f32[8,8,128], index: 2, kind: output, shape index: {}]  }
   0x1   :  { %9 = vsyncpa [#allocation3 + $0x1], 0 }
   0x2   :  { %10 = vsyncpa [#allocation4], 0 }
   0x3   :  { %12 = vsyncpa [#allocation4 + $0x1], 0  ;;  %s521_s9 = smov 0   ;;  %s523_s10 = smov 0  }
   0x4   :  { %s525_s11 = smov 0   ;;  %s527_s12 = smov 0  }
   0x5 LB: > { %s542_s13 = sadd.s32 4294967295, %s501_s12   ;;  %s341_s14 = sadd.s32 4294967294, %s501_s12   ;;  %s501_s12 = sphi %s527_s12, %s691_s12   ;;  %s497_s11 = sphi %s525_s11, %s690_s11   ;;  %s493_s10 = sphi %s523_s10, %s689_s10   ;;  %s489_s9 = sphi %s521_s9, %s688_s9  }
   0x6   : > { %s546_s15 = sadd.s32 1, %s501_s12   ;;  %s51_s16 = sadd.s32 1, %s497_s11 }
   0x7   : > { %s48_s17 = ssub.s32 %s501_s12, %s546_s15  ;;  %p58_p0 = scmp.ne.s32.totalorder %s497_s11, %s493_s10 }
   0x8   : > { %p49_p1 = scmp.eq.s32.totalorder %s48_s17, 0  ;;  %p59_p2 = scmp.eq.s32.totalorder %s501_s12, 0 }
   0x9   : > { %p64_p3 = scmp.ne.s32.totalorder %s493_s10, %s489_s9  ;;  %p65_p4 = scmp.eq.s32.totalorder %s542_s13, 0 }
   0xa   : > { %s558_s18 = scalar_select %p49_p1, %s497_s11, %s51_s16  }
   0xb   : > { %p560_p5 = por %p59_p2, %p58_p0  ;;  %p564_p6 = por %p65_p4, %p64_p3 }
   0xc   : > { %p88_p7 = scmp.eq.s32.totalorder %s542_s13, 7  ;;  %p94_p8 = scmp.eq.s32.totalorder %s341_s14, 7 }
   0xd   : > { %s679_s20 = scalar_select %p564_p6, 1, 0 }
   0xe   : > { %p373_p9 = scmp.lt.s32.totalorder %s501_s12, 8  ;;  %p570_p10 = por %p88_p7, %p58_p0 }
   0xf   : > { %p574_p11 = por %p94_p8, %p64_p3  ;;  %s121_s23 = sand.u32 1, %s497_s11  }
  0x10   : > { %s680_s21 = scalar_select %p570_p10, 1, 0 }
  0x11   : > { %s681_s22 = scalar_select %p574_p11, 1, 0 }
  0x12   : > { %s356_s24 = sshll.u32 %s501_s12, 8  ;;  %s344_s25 = sshll.u32 %s121_s23, 4 }
  0x13   : > { %s583_s28 = scalar_lea.hbm %s674_s1, %s356_s24  ;;  %s125_s29 = scalar_lea.vmem [#allocation2], %s344_s25 }
  0x14   : > { %s133_s30 = sshll.u32 %s125_s29, 4  ;;  %p587_p12 = pnand %p373_p9, %p560_p5  ;;  %s591_s30 = int_to_ptr.vmem [resolvable:$true] %s133_s30 }
  0x15   : > { %s122_s4 = scalar_lea.sflag [#allocation3], %s121_s23  ;;  %s409_s5 = scalar_lea.hbm %s583_s28, 256 }
  0x16   : > { %p410_p1 = scmp.ne.s32.totalorder %s583_s28, %s409_s5  ;;  %p411_p2 = pneg %p587_p12 }
  0x17   : > { %s414_s8 = scalar_lea.hbm %s674_s1, 2048  ;;  %p415_p5 = scmp.lt.s32.totalorder %s583_s28, %s674_s1 }
  0x18   : > { %p412_p3 = pnand %p411_p2, %p410_p1  ;;  %p416_p7 = scmp.lt.s32.totalorder %s414_s8, %s409_s5 }
  0x1a   : > { %p413_p4 = pneg %p412_p3  ;;  %p417_p8 = por %p416_p7, %p415_p5 }
  0x1c   : > { %p418_p9 = pnand %p417_p8, %p413_p4 }
  0x1e   : > { %421 = shalt.err (!%p418_p9)
}
  0x1f   : > { %s422_s17 = scalar_lea.vmem %s591_s30, 256  ;;  %s503_s19 = smov [#allocation2]  }
  0x20   : > { %p423_p13 = scmp.ne.s32.totalorder %s591_s30, %s422_s17  ;;  %s427_s23 = sshll.u32 %s503_s19, 4  ;;  %s428_s23 = int_to_ptr.vmem [resolvable:$false] %s427_s23 }
  0x21   : > { %s429_s24 = scalar_lea.vmem %s428_s23, 512  ;;  %p430_p3 = scmp.lt.s32.totalorder %s591_s30, %s428_s23 }
  0x22   : > { %p425_p0 = pnand %p423_p13, %p411_p2  ;;  %p431_p11 = scmp.lt.s32.totalorder %s429_s24, %s422_s17 }
  0x24   : > { %p426_p1 = pneg %p425_p0  ;;  %p432_p10 = por %p431_p11, %p430_p3 }
  0x26   : > { %p433_p6 = pnand %p432_p10, %p426_p1 }
  0x28   : > { %436 = shalt.err (!%p433_p6)
}
  0x29   : > { %368 = dma.hbm_to_vmem [thread:$0]  (!%p587_p12), %s583_s28, 256, %s591_s30, %s122_s4  }
  0x2a   : > { %p683_p4 = scmp.lt.s32.totalorder %s501_s12, 9  ;;  %p684_p5 = scmp.ge.s32.totalorder %s501_s12, 1 }
  0x2c   : > { %p139_p13 = pnand %p684_p5, %p683_p4 }
  0x2d   : > { %s618_s25 = sand.u32 (!%p139_p13), 1, %s493_s10   ;;  %p685_p6 = scmp.ne.s32.totalorder (!%p139_p13), %s679_s20, 0 }
  0x2e   : > { %142 = sbr.rel (%p139_p13) target bundleno = 417 (0x1a1), region = 28  ;;  %s348_s26 = sshll.u32 (!%p139_p13), %s618_s25, 4 }
  0x2f   : > { %s145_s27 = scalar_lea.sflag (!%p139_p13), [#allocation3], %s618_s25  ;;  %s148_s29 = scalar_lea.vmem (!%p139_p13), [#allocation2], %s348_s26 }
  0x33   : > { %480 = dma.done.wait (%p685_p6), %s145_s27, 256  }
  0x34   : > { %482 = vsyncadd (%p685_p6), %s145_s27, 4294967040  ;;  %p173_p10 = scmp.lt.s32.totalorder %s542_s13, 7  ;;  %v180_v0 = vlaneseq  ;;  %s351_s28 = sshll.u32 %s542_s13, 3  ;;  %v504_v1 = vmov 0   ;;  %v177_v10 = vld [vmem:[%s148_s29] sm:$0xff]  ;;  %v178_v11 = vld [vmem:[%s148_s29 + $0x8] sm:$0xff] }
  0x35   : > { %408 = vset.pattern.permute.xlu0 %v504_v1  ;;  %v183_v2 = vstv %s351_s28  ;;  %s349_s7 = sshll.u32 %s618_s25, 3  ;;  %s353_s19 = sshll.u32 %s542_s13, 7 }
  0x36   : > { %s174_s30 = scalar_select %p173_p10, %s542_s13, 7  ;;  %v181_v3 = vshrl.u32 %v180_v0, 7  ;;  %v189_v7 = vand.u32 127, %v180_v0 }
  0x37   : > { %s172_s23 = scalar_lea.vmem [#allocation5], %s349_s7  ;;  %s637_s28 = scalar_lea.hbm %s675_s2, %s353_s19 }
  0x38   : > { %s350_s3 = sshll.u32 %s174_s30, 3  ;;  %v184_v4 = vadd.s32 %v183_v2, %v181_v3  ;;  %v190_v9 = vadd.s32 128, %v189_v7  ;;  %vm219_vm4 = vcmp.ne.s32.totalorder %v189_v7, 0  ;;  %vm239_vm7 = vcmp.eq.s32.totalorder %v181_v3, 0  ;;  %s259_s24 = sshll.u32 %s172_s23, 4  ;;  %s260_s24 = int_to_ptr.vmem [resolvable:$true] %s259_s24 }
  0x39   : > { %s176_s6 = scalar_lea.vmem %s673_s0, %s350_s3  ;;  %vm240_vm8 = vcmp.eq.s32.totalorder %v189_v7, 0  ;;  %s246_s30 = scalar_lea.sflag [#allocation4], %s618_s25 }
  0x3a   : > { %vm186_vm0 = vcmp.lt.s32.totalorder %v184_v4, 64  ;;  %v179_v5 = vld [vmem:[%s176_s6] sm:$0xff]  ;;  %vm241_vm9 = vmand %vm239_vm7, %vm240_vm8  ;;  %s437_s3 = scalar_lea.vmem %s260_s24, 128  ;;  %p686_p12 = scmp.ne.s32.totalorder %s680_s21, 0 }
  0x3b   : > { %vm185_vm1 = vcmp.ne.s32.totalorder %v179_v5, 0  ;;  %p438_p11 = scmp.ne.s32.totalorder %s260_s24, %s437_s3  ;;  %s505_s13 = smov [#allocation5]  }
  0x3c   : > { %vm187_vm2 = vmand %vm185_vm1, %vm186_vm0  ;;  %s441_s4 = sshll.u32 %s505_s13, 4  ;;  %s442_s4 = int_to_ptr.vmem [resolvable:$false] %s441_s4 }
  0x3d   : > { %v196_v6 = vsel %vm187_vm2, 1, %v504_v1  ;;  %p439_p0 = pnand %p438_p11, %p686_p12  ;;  %s443_s5 = scalar_lea.vmem %s442_s4, 256 }
  0x3e   : > { %198 = vperm.xlu0 %408, %v196_v6   ;;  %p444_p7 = scmp.lt.s32.totalorder %s260_s24, %s442_s4  ;;  %p445_p8 = scmp.lt.s32.totalorder %s443_s5, %s437_s3 }
  0x3f   : > { %p440_p2 = pneg %p439_p0 }
  0x40   : > { %p446_p9 = por %p445_p8, %p444_p7 }
  0x42   : > { %192 = vperm.xlu0 %408, %v179_v5   ;;  %p447_p1 = pnand %p446_p9, %p440_p2 }
  0xb9   : > { %v199_v8 = vpop.permute.xlu0 %198 }
  0xba   : > { %vm200_vm3 = vcmp.eq.s32.totalorder %v199_v8, 1 }
  0xbb   : > { %v201_v13 = vsel %vm200_vm3, %v177_v10, 0.0  ;;  %v202_v14 = vsel %vm200_vm3, %v178_v11, 0.0 }
  0xbd   : > { %v193_v12 = vpop.permute.xlu0 %192 }
  0xbe   : > { %vm194_vm5 = vcmp.eq.s32.totalorder %v189_v7, %v193_v12  ;;  %vm195_vm6 = vcmp.eq.s32.totalorder %v190_v9, %v193_v12 }
  0xbf   : > { %v217_v15 = vsel %vm194_vm5, 0.0, %v201_v13  ;;  %v203_v16 = vsel %vm194_vm5, %v201_v13, 0.0  ;;  %v204_v17 = vsel %vm195_vm6, %v202_v14, 0.0  ;;  %v218_v19 = vsel %vm195_vm6, 0.0, %v202_v14 }
  0xc0   : > { %v205_v18 = vadd.f32 %v204_v17, %v203_v16  ;;  %v225_v20 = vsel %vm219_vm4, %v217_v15, 0.0 }
  0xc1   : > { %v227_v21 = vadd.f32 %v225_v20, %v218_v19 }
  0xc2   : > { %206 = vadd.xlane.f32.xlu1 %v205_v18 }
  0xc6   : > { %228 = vadd.xlane.f32.xlu1 %v227_v21 }
 0x14b   : > { %v207_v22 = vpop.xlane.xlu1 %206 }
 0x14c   : > { %v208_v23 = vrot.slane %v207_v22, 4 }
 0x14e   : > { %v209_v24 = vadd.f32 %v208_v23, %v207_v22 }
 0x14f   : > { %v229_v25 = vpop.xlane.xlu1 %228 }
 0x150   : > { %v210_v26 = vrot.slane %v209_v24, 2  ;;  %v230_v27 = vrot.slane %v229_v25, 4 }
 0x152   : > { %v231_v28 = vadd.f32 %v230_v27, %v229_v25  ;;  %v211_v29 = vadd.f32 %v210_v26, %v209_v24 }
 0x154   : > { %v232_v30 = vrot.slane %v231_v28, 2  ;;  %v212_v31 = vrot.slane %v211_v29, 1 }
 0x156   : > { %v233_v32 = vadd.f32 %v232_v30, %v231_v28  ;;  %v213_v33 = vadd.f32 %v212_v31, %v211_v29 }
 0x158   : > { %357 = vpush %v213_v33  ;;  %v234_v34 = vrot.slane %v233_v32, 1 }
 0x15a   : > { %v235_v35 = vadd.f32 %v234_v34, %v233_v32 }
 0x15c   : > { %359 = vpush %v235_v35 }
 0x189   : > { %s358_s20 = spop %357 }
 0x18a   : > { %s215_s8 = smul.f32 0.9, %s358_s20 }
 0x18c   : > { %s216_s16 = ssub.f32 0.0, %s215_s8 }
 0x18d   : > { %s360_s14 = spop %359 }
 0x18e   : > { %s237_s17 = smul.f32 0.0003937008, %s360_s14 }
 0x190   : > { %s238_s26 = ssub.f32 %s216_s16, %s237_s17 }
 0x192   : > { %v242_v36 = vstv %s238_s26 }
 0x193   : > { %v243_v37 = vsel %vm241_vm9, %v242_v36, 0.0 }
 0x194   : > { %244 = vst [vmem:[%s172_s23] sm:$0xff] %v243_v37 }
 0x195   : > { %450 = shalt.err (!%p447_p1)
}
 0x196   : > { %s451_s6 = scalar_lea.hbm %s637_s28, 128  ;;  %s455_s7 = scalar_lea.hbm %s675_s2, 1024 }
 0x197   : > { %p452_p3 = scmp.ne.s32.totalorder %s637_s28, %s451_s6  ;;  %p456_p13 = scmp.lt.s32.totalorder %s637_s28, %s675_s2 }
 0x198   : > { %p457_p6 = scmp.lt.s32.totalorder %s455_s7, %s451_s6 }
 0x199   : > { %p453_p4 = pnand %p452_p3, %p686_p12 }
 0x19a   : > { %p458_p10 = por %p457_p6, %p456_p13 }
 0x19b   : > { %p454_p5 = pneg %p453_p4 }
 0x19d   : > { %p459_p11 = pnand %p458_p10, %p454_p5 }
 0x19f   : > { %462 = shalt.err (!%p459_p11)
}
 0x1a0   : > { %363 = dma.vmem_to_hbm [thread:$0]  (%p686_p12), %s260_s24, 128, %s637_s28, %s246_s30  }
 0x1a1 PF: > { %p374_p0 = scmp.ge.s32.totalorder %s501_s12, 2  ;;  %s271_s16 = sand.u32 1, %s489_s9  }
 0x1a2   : > { %p687_p2 = scmp.ne.s32.totalorder %s681_s22, 0  ;;  %s272_s17 = scalar_lea.sflag [#allocation4], %s271_s16 }
 0x1a4   : > { %p370_p7 = pnand %p374_p0, %p687_p2 }
 0x1a6   : > { %p371_p8 = pneg %p370_p7 }
 0x1a8   : > { %484 = dma.done.wait (%p371_p8), %s272_s17, 128  }
 0x1a9   : > { %486 = vsyncadd (%p371_p8), %s272_s17, 4294967168  ;;  %p15_p9 = scmp.ge.s32.totalorder %s546_s15, 10   ;;  %s688_s9 = smov %s493_s10 }
 0x1aa   : > { %s689_s10 = smov %s497_s11  ;;  %s690_s11 = smov %s558_s18 }
 0x1ab   : > { %s691_s12 = smov %s546_s15  ;;  %17 = sbr.rel (!%p15_p9) target bundleno = 5 (0x5), region = 76 }
 0x1b0   :  { %277 = vsyncpa [#allocation3], 1 }
 0x1b1   :  { %279 = vsyncpa [#allocation3 + $0x1], 1 }
 0x1b2   :  { %280 = vsyncpa [#allocation4], 1 }
 0x1b3   :  { %282 = vsyncpa [#allocation4 + $0x1], 1 }

</bundles_post_ra>
